<compile_context>
chip_gen: v7x
topology: tpu7x:2x2x1
jax: 0.10.0
libtpu: 0.0.40
codegen_flags: <defaults>
</compile_context>

<pallas_src>
import functools

import jax
import jax.numpy as jnp
from jax import lax
from jax.experimental import pallas as pl
from jax.experimental.pallas import tpu as pltpu


def _gdl_kernel(x_ref, lab_ref, out_ref, *accs,
                smooth, square, square_volumes, first_ch,
                r_total, needs_row_mask):
    s = pl.program_id(1)
    ns = pl.num_programs(1)

    @pl.when(s == 0)
    def _init():
        for a in accs:
            a[...] = jnp.zeros_like(a)

    C = x_ref.shape[1]
    R = x_ref.shape[2]
    L = x_ref.shape[3]

    x = x_ref[0].astype(jnp.float32)          # (C, R, 128) probabilities
    lab = lab_ref[0]                          # (R, 128) int32 labels (-1 on lane pad)

    if needs_row_mask:
        # Last row-block is partial: rows >= r_total hold unspecified data.
        row = lax.broadcasted_iota(jnp.int32, (R, L), 0) + s * R
        valid = row < r_total                 # (R, 128) bool
        lab = jnp.where(valid, lab, -1)       # never matches any channel
        x_sum = jnp.where(valid[None, :, :], x, 0.0)
    else:
        x_sum = x

    chan = lax.broadcasted_iota(jnp.int32, (C, R, L), 0)
    m = chan == lab                           # on-the-fly one-hot, (C, R, 128) bool
    mf = m.astype(jnp.float32)
    xm = jnp.where(m, x_sum, 0.0)

    # Per-lane partial sums (sublane reduce only); cross-lane reduce at finalize.
    if not square:
        acc_xy, acc_x, acc_y = accs
        acc_xy[...] += jnp.sum(xm, axis=-2, keepdims=True)       # sum x*y
        acc_x[...] += jnp.sum(x_sum, axis=-2, keepdims=True)     # sum x
        acc_y[...] += jnp.sum(mf, axis=-2, keepdims=True)        # sum y
    else:
        # Binary y: (x*y)^2 = x^2*y, (x*(1-y))^2 = x^2 - x^2*y,
        #           ((1-x)*y)^2 = y - 2*x*y + x^2*y.
        acc_x2y, acc_x2, acc_y, acc_xy = accs
        x2 = x_sum * x_sum
        x2m = jnp.where(m, x2, 0.0)
        acc_x2y[...] += jnp.sum(x2m, axis=-2, keepdims=True)
        acc_x2[...] += jnp.sum(x2, axis=-2, keepdims=True)
        acc_y[...] += jnp.sum(mf, axis=-2, keepdims=True)
        acc_xy[...] += jnp.sum(xm, axis=-2, keepdims=True)

    @pl.when(s == ns - 1)
    def _finalize():
        if not square:
            acc_xy, acc_x, acc_y = accs
            s_xy = jnp.sum(acc_xy[...], axis=-1, keepdims=True)   # (C, 1, 1)
            s_x = jnp.sum(acc_x[...], axis=-1, keepdims=True)
            s_y = jnp.sum(acc_y[...], axis=-1, keepdims=True)
            tp = s_xy
            fp = s_x - s_xy
            # fn can be ~-1e-7 from rounding when x ~= one-hot; harmless in dice.
            fn = s_y - s_xy
        else:
            acc_x2y, acc_x2, acc_y, acc_xy = accs
            s_x2y = jnp.sum(acc_x2y[...], axis=-1, keepdims=True)
            s_x2 = jnp.sum(acc_x2[...], axis=-1, keepdims=True)
            s_y = jnp.sum(acc_y[...], axis=-1, keepdims=True)
            s_xy = jnp.sum(acc_xy[...], axis=-1, keepdims=True)
            tp = s_x2y
            fp = s_x2 - s_x2y
            fn = s_y - 2.0 * s_xy + s_x2y
        vol = s_y + 1e-6
        if square_volumes:
            vol = vol * vol
        inv = 1.0 / vol
        tp = tp * inv
        fp = fp * inv
        fn = fn * inv
        if first_ch > 0:
            # do_bg=False: exclude background channel(s) from the channel sum
            # (x was NOT sliced in HBM).
            keep = lax.broadcasted_iota(jnp.int32, tp.shape, 0) >= first_ch
            keepf = keep.astype(jnp.float32)
            tp = tp * keepf
            fp = fp * keepf
            fn = fn * keepf
        tp_s = jnp.sum(tp, axis=0, keepdims=True)     # (1, 1, 1)
        fp_s = jnp.sum(fp, axis=0, keepdims=True)
        fn_s = jnp.sum(fn, axis=0, keepdims=True)
        dc = (2.0 * tp_s + smooth) / (2.0 * tp_s + fp_s + fn_s + smooth)
        out_ref[...] = dc


def gdl_loss(x, y, *, smooth=1.0, square=False, square_volumes=False,
             do_bg=True, block_bytes=4 * 1024 * 1024, max_block_rows=None):
    """x: (B, C, *spatial) float probs (f32 or bf16); y: (B, *spatial) /
    (B, 1, *spatial) integer label map, or (B, C, *spatial) one-hot.
    Returns scalar -GDL.  Module config: apply_nonlin=None, batch_dice=False,
    loss_mask=None.  `block_bytes` ~ f32 bytes of x per grid step."""
    B, C = int(x.shape[0]), int(x.shape[1])
    spatial = x.shape[2:]
    S = 1
    for d in spatial:
        S *= int(d)

    # ---- label map: (B, S) int32 (no f32 one-hot is ever materialized in HBM)
    if y.ndim == x.ndim and y.shape == x.shape:
        # TODO(synk): soft (non-binary) one-hot targets collapse to hard labels here.
        lab = jnp.argmax(y, axis=1)
    elif y.ndim == x.ndim:
        lab = y[:, 0]
    else:
        lab = y
    lab = lab.reshape(B, S).astype(jnp.int32)

    x_f = x.reshape(B, C, S)                  # keep HBM dtype (bf16 stays bf16)

    # Lane-dense layout: spatial -> (rows, 128).  Pad only to the next multiple
    # of 128 (<=127 elems; zeros for x, -1 for labels so padding never matches a
    # channel).  No pad to a tile multiple: the ragged last row-block is masked
    # in-kernel.
    R_total = (S + 127) // 128
    S_pad = R_total * 128
    if S_pad != S:
        x_f = jnp.pad(x_f, ((0, 0), (0, 0), (0, S_pad - S)))
        lab = jnp.pad(lab, ((0, 0), (0, S_pad - S)), constant_values=-1)
    x4 = x_f.reshape(B, C, R_total, 128)
    lab3 = lab.reshape(B, R_total, 128)

    # ---- row-block size: ~block_bytes of f32 x per step amortizes the ~0.35us
    # per-step overhead; 2x double-buffered inputs + in-kernel f32 temporaries
    # stay under the 48 MiB scoped VMEM limit (v7x has 64 MiB physical per core,
    # v5e/v6e have 128 MiB).
    if max_block_rows is None:
        max_block_rows = max(8, (block_bytes // (C * 128 * 4)) // 8 * 8)
    else:
        max_block_rows = max(8, (int(max_block_rows) // 8) * 8)
    if R_total <= max_block_rows:
        R_blk = R_total            # whole image per step (block == full dim is legal)
    else:
        R_blk = max_block_rows     # multiple of 8
    NS = (R_total + R_blk - 1) // R_blk
    needs_row_mask = (R_total % R_blk) != 0

    n_acc = 4 if square else 3
    kernel = functools.partial(
        _gdl_kernel,
        smooth=float(smooth),
        square=bool(square),
        square_volumes=bool(square_volumes),
        first_ch=0 if do_bg else 1,
        r_total=int(R_total),
        needs_row_mask=bool(needs_row_mask),
    )

    cost = pl.CostEstimate(
        flops=int(B * C * S_pad * 8),
        transcendentals=0,
        bytes_accessed=int(x4.size * x4.dtype.itemsize
                           + lab3.size * lab3.dtype.itemsize + B * 4))

    per_sample = pl.pallas_call(
        kernel,
        out_shape=jax.ShapeDtypeStruct((B, 1, 1), jnp.float32),
        grid_spec=pltpu.PrefetchScalarGridSpec(
            num_scalar_prefetch=0,
            grid=(B, NS),                      # batch outer (parallel), rows inner
            in_specs=[
                pl.BlockSpec((1, C, R_blk, 128), lambda b, s: (b, 0, s, 0)),
                pl.BlockSpec((1, R_blk, 128), lambda b, s: (b, s, 0)),
            ],
            out_specs=pl.BlockSpec((1, 1, 1), lambda b, s: (b, 0, 0)),
            scratch_shapes=[pltpu.VMEM((C, 1, 128), jnp.float32)] * n_acc,
        ),
        compiler_params=pltpu.CompilerParams(
            dimension_semantics=("parallel", "arbitrary"),
            vmem_limit_bytes=48 * 1024 * 1024),
        cost_estimate=cost,
    )(x4, lab3)

    # batch_dice=False: per-sample dice, mean over batch, negate (kept in the
    # wrapper so the batch grid axis stays "parallel" across TensorCores).
    return -jnp.mean(per_sample)


def _gdl_ref(x, y, smooth=1.0, square=False, square_volumes=False, do_bg=True):
    """Pure-JAX reference mirroring the PyTorch GDL (batch_dice=False)."""
    B, C = x.shape[0], x.shape[1]
    spatial = x.shape[2:]
    y1 = jax.nn.one_hot(y.reshape((B,) + tuple(spatial)).astype(jnp.int32), C,
                        dtype=jnp.float32)
    y1 = jnp.moveaxis(y1, -1, 1)
    x = x.astype(jnp.float32)
    if not do_bg:
        x = x[:, 1:]
        y1 = y1[:, 1:]
    axes = tuple(range(2, x.ndim))
    tp = x * y1
    fp = x * (1.0 - y1)
    fn = (1.0 - x) * y1
    if square:
        tp, fp, fn = tp * tp, fp * fp, fn * fn
    tp = jnp.sum(tp, axes)
    fp = jnp.sum(fp, axes)
    fn = jnp.sum(fn, axes)
    vol = jnp.sum(y1, axes) + 1e-6
    if square_volumes:
        vol = vol * vol
    tp, fp, fn = tp / vol, fp / vol, fn / vol
    tp, fp, fn = tp.sum(1), fp.sum(1), fn.sum(1)
    dc = (2.0 * tp + smooth) / (2.0 * tp + fp + fn + smooth)
    return -dc.mean()


if __name__ == "__main__":
    key = jax.random.PRNGKey(0)
    k1, k2, k3, k4, k5, k6 = jax.random.split(key, 6)

    # Config 1: module defaults; S divisible by 128; whole image per grid step.
    B, C, H, W = 2, 4, 16, 16
    x = jax.random.uniform(k1, (B, C, H, W), dtype=jnp.float32)
    y = jax.random.randint(k2, (B, H, W), 0, C, dtype=jnp.int32)
    out = jax.block_until_ready(gdl_loss(x, y))
    ref = jax.block_until_ready(_gdl_ref(x, y))
    assert jnp.allclose(out, ref, rtol=1e-4, atol=1e-5), (out, ref)

    # Config 2: square + square_volumes + do_bg=False, non-128-aligned spatial
    # (exercises lane padding and background-channel exclusion at finalize).
    B2, C2, H2, W2 = 2, 4, 10, 30
    x2 = jax.random.uniform(k3, (B2, C2, H2, W2), dtype=jnp.float32)
    y2 = jax.random.randint(k4, (B2, H2, W2), 0, C2, dtype=jnp.int32)
    out2 = jax.block_until_ready(
        gdl_loss(x2, y2, square=True, square_volumes=True, do_bg=False))
    ref2 = jax.block_until_ready(
        _gdl_ref(x2, y2, square=True, square_volumes=True, do_bg=False))
    assert jnp.allclose(out2, ref2, rtol=1e-4, atol=1e-5), (out2, ref2)

    # Config 3: bf16 probabilities, multi-step spatial grid with a ragged last
    # row-block (exercises the in-kernel row mask and f32 accumulation).
    B3, C3, H3, W3 = 1, 3, 40, 64            # S = 2560 -> 20 rows of 128
    x3 = jax.random.uniform(k5, (B3, C3, H3, W3),
                            dtype=jnp.float32).astype(jnp.bfloat16)
    y3 = jax.random.randint(k6, (B3, H3, W3), 0, C3, dtype=jnp.int32)
    out3 = jax.block_until_ready(gdl_loss(x3, y3, max_block_rows=8))
    ref3 = jax.block_until_ready(_gdl_ref(x3, y3))
    assert jnp.allclose(out3, ref3, rtol=1e-4, atol=1e-5), (out3, ref3)

    print("KERNEL_OK")
</pallas_src>

<mosaic_0001>
module attributes {stable_mosaic.version = 11 : i64} {
  func.func @_gdl_kernel(%arg0: i32, %arg1: i32, %arg2: memref<1x4x2x128xf32, #tpu.memory_space<vmem>>, %arg3: memref<1x2x128xi32, #tpu.memory_space<vmem>>, %arg4: memref<1x1x1xf32, #tpu.memory_space<vmem>>, %arg5: memref<4x1x128xf32, #tpu.memory_space<vmem>>, %arg6: memref<4x1x128xf32, #tpu.memory_space<vmem>>, %arg7: memref<4x1x128xf32, #tpu.memory_space<vmem>>) attributes {dimension_semantics = [#tpu.dimension_semantics<parallel>, #tpu.dimension_semantics<arbitrary>], iteration_bounds = array<i64: 2, 1>, scalar_prefetch = 0 : i64, scratch_operands = 3 : i64, tpu.core_type = #tpu.core_type<tc>, window_params = [{transform_indices = @transform_0, window_bounds = array<i64: 1, 4, 2, 128>}, {transform_indices = @transform_1, window_bounds = array<i64: 1, 2, 128>}, {transform_indices = @transform_2, window_bounds = array<i64: 1, 1, 1>}]} {
    %c0_i32 = arith.constant 0 : i32
    %0 = arith.cmpi eq, %arg1, %c0_i32 : i32
    %1 = arith.extui %0 : i1 to i32
    %c0_i32_0 = arith.constant 0 : i32
    %2 = arith.cmpi ne, %1, %c0_i32_0 : i32
    scf.if %2 {
      %cst_30 = arith.constant 0.000000e+00 : f32
      %33 = vector.broadcast %cst_30 : f32 to vector<4x1x128xf32>
      %c0_31 = arith.constant 0 : index
      %c0_32 = arith.constant 0 : index
      %c0_33 = arith.constant 0 : index
      %34 = vector.load %arg5[%c0_31, %c0_32, %c0_33] : memref<4x1x128xf32, #tpu.memory_space<vmem>>, vector<4x1x128xf32>
      tpu.vector_store %arg5[%c0_31, %c0_32, %c0_33], %33 {strides = array<i32>} : memref<4x1x128xf32, #tpu.memory_space<vmem>>, vector<4x1x128xf32>,
      %cst_34 = arith.constant 0.000000e+00 : f32
      %35 = vector.broadcast %cst_34 : f32 to vector<4x1x128xf32>
      %c0_35 = arith.constant 0 : index
      %c0_36 = arith.constant 0 : index
      %c0_37 = arith.constant 0 : index
      %36 = vector.load %arg6[%c0_35, %c0_36, %c0_37] : memref<4x1x128xf32, #tpu.memory_space<vmem>>, vector<4x1x128xf32>
      tpu.vector_store %arg6[%c0_35, %c0_36, %c0_37], %35 {strides = array<i32>} : memref<4x1x128xf32, #tpu.memory_space<vmem>>, vector<4x1x128xf32>,
      %cst_38 = arith.constant 0.000000e+00 : f32
      %37 = vector.broadcast %cst_38 : f32 to vector<4x1x128xf32>
      %c0_39 = arith.constant 0 : index
      %c0_40 = arith.constant 0 : index
      %c0_41 = arith.constant 0 : index
      %38 = vector.load %arg7[%c0_39, %c0_40, %c0_41] : memref<4x1x128xf32, #tpu.memory_space<vmem>>, vector<4x1x128xf32>
      tpu.vector_store %arg7[%c0_39, %c0_40, %c0_41], %37 {strides = array<i32>} : memref<4x1x128xf32, #tpu.memory_space<vmem>>, vector<4x1x128xf32>,
    } else {
    }
    %c0 = arith.constant 0 : index
    %c0_1 = arith.constant 0 : index
    %c0_2 = arith.constant 0 : index
    %c0_3 = arith.constant 0 : index
    %3 = vector.load %arg2[%c0, %c0_1, %c0_2, %c0_3] : memref<1x4x2x128xf32, #tpu.memory_space<vmem>>, vector<1x4x2x128xf32>
    %4 = vector.shape_cast %3 : vector<1x4x2x128xf32> to vector<4x2x128xf32>
    %c0_4 = arith.constant 0 : index
    %c0_5 = arith.constant 0 : index
    %c0_6 = arith.constant 0 : index
    %5 = vector.load %arg3[%c0_4, %c0_5, %c0_6] : memref<1x2x128xi32, #tpu.memory_space<vmem>>, vector<1x2x128xi32>
    %6 = vector.shape_cast %5 : vector<1x2x128xi32> to vector<2x128xi32>
    %7 = tpu.iota {dimensions = array<i32: 0>} : vector<4x2x128xi32>
    %8 = vector.shape_cast %6 : vector<2x128xi32> to vector<1x2x128xi32>
    %9 = vector.broadcast %8 : vector<1x2x128xi32> to vector<4x2x128xi32>
    %10 = arith.cmpi eq, %7, %9 : vector<4x2x128xi32>
    %11 = arith.extui %10 : vector<4x2x128xi1> to vector<4x2x128xi32>
    %12 = arith.sitofp %11 : vector<4x2x128xi32> to vector<4x2x128xf32>
    %cst = arith.constant 0.000000e+00 : f32
    %13 = vector.broadcast %cst : f32 to vector<4x2x128xf32>
    %14 = arith.select %10, %4, %13 : vector<4x2x128xi1>, vector<4x2x128xf32>
    %c0_7 = arith.constant 0 : index
    %c0_8 = arith.constant 0 : index
    %c0_9 = arith.constant 0 : index
    %15 = vector.load %arg5[%c0_7, %c0_8, %c0_9] : memref<4x1x128xf32, #tpu.memory_space<vmem>>, vector<4x1x128xf32>
    %cst_10 = arith.constant dense<0.000000e+00> : vector<4x128xf32>
    %16 = vector.multi_reduction <add>, %14, %cst_10 [1] : vector<4x2x128xf32> to vector<4x128xf32>
    %17 = vector.shape_cast %16 : vector<4x128xf32> to vector<4x1x128xf32>
    %18 = arith.addf %15, %17 : vector<4x1x128xf32>
    %c0_11 = arith.constant 0 : index
    %c0_12 = arith.constant 0 : index
    %c0_13 = arith.constant 0 : index
    %19 = vector.load %arg5[%c0_11, %c0_12, %c0_13] : memref<4x1x128xf32, #tpu.memory_space<vmem>>, vector<4x1x128xf32>
    tpu.vector_store %arg5[%c0_11, %c0_12, %c0_13], %18 {strides = array<i32>} : memref<4x1x128xf32, #tpu.memory_space<vmem>>, vector<4x1x128xf32>,
    %c0_14 = arith.constant 0 : index
    %c0_15 = arith.constant 0 : index
    %c0_16 = arith.constant 0 : index
    %20 = vector.load %arg6[%c0_14, %c0_15, %c0_16] : memref<4x1x128xf32, #tpu.memory_space<vmem>>, vector<4x1x128xf32>
    %cst_17 = arith.constant dense<0.000000e+00> : vector<4x128xf32>
    %21 = vector.multi_reduction <add>, %4, %cst_17 [1] : vector<4x2x128xf32> to vector<4x128xf32>
    %22 = vector.shape_cast %21 : vector<4x128xf32> to vector<4x1x128xf32>
    %23 = arith.addf %20, %22 : vector<4x1x128xf32>
    %c0_18 = arith.constant 0 : index
    %c0_19 = arith.constant 0 : index
    %c0_20 = arith.constant 0 : index
    %24 = vector.load %arg6[%c0_18, %c0_19, %c0_20] : memref<4x1x128xf32, #tpu.memory_space<vmem>>, vector<4x1x128xf32>
    tpu.vector_store %arg6[%c0_18, %c0_19, %c0_20], %23 {strides = array<i32>} : memref<4x1x128xf32, #tpu.memory_space<vmem>>, vector<4x1x128xf32>,
    %c0_21 = arith.constant 0 : index
    %c0_22 = arith.constant 0 : index
    %c0_23 = arith.constant 0 : index
    %25 = vector.load %arg7[%c0_21, %c0_22, %c0_23] : memref<4x1x128xf32, #tpu.memory_space<vmem>>, vector<4x1x128xf32>
    %cst_24 = arith.constant dense<0.000000e+00> : vector<4x128xf32>
    %26 = vector.multi_reduction <add>, %12, %cst_24 [1] : vector<4x2x128xf32> to vector<4x128xf32>
    %27 = vector.shape_cast %26 : vector<4x128xf32> to vector<4x1x128xf32>
    %28 = arith.addf %25, %27 : vector<4x1x128xf32>
    %c0_25 = arith.constant 0 : index
    %c0_26 = arith.constant 0 : index
    %c0_27 = arith.constant 0 : index
    %29 = vector.load %arg7[%c0_25, %c0_26, %c0_27] : memref<4x1x128xf32, #tpu.memory_space<vmem>>, vector<4x1x128xf32>
    tpu.vector_store %arg7[%c0_25, %c0_26, %c0_27], %28 {strides = array<i32>} : memref<4x1x128xf32, #tpu.memory_space<vmem>>, vector<4x1x128xf32>,
    %c0_i32_28 = arith.constant 0 : i32
    %30 = arith.cmpi eq, %arg1, %c0_i32_28 : i32
    %31 = arith.extui %30 : i1 to i32
    %c0_i32_29 = arith.constant 0 : i32
    %32 = arith.cmpi ne, %31, %c0_i32_29 : i32
    scf.if %32 {
      %c0_30 = arith.constant 0 : index
      %c0_31 = arith.constant 0 : index
      %c0_32 = arith.constant 0 : index
      %33 = vector.load %arg5[%c0_30, %c0_31, %c0_32] : memref<4x1x128xf32, #tpu.memory_space<vmem>>, vector<4x1x128xf32>
      %cst_33 = arith.constant dense<0.000000e+00> : vector<4x1xf32>
      %34 = vector.multi_reduction <add>, %33, %cst_33 [2] : vector<4x1x128xf32> to vector<4x1xf32>
      %35 = vector.shape_cast %34 : vector<4x1xf32> to vector<4x1x1xf32>
      %c0_34 = arith.constant 0 : index
      %c0_35 = arith.constant 0 : index
      %c0_36 = arith.constant 0 : index
      %36 = vector.load %arg6[%c0_34, %c0_35, %c0_36] : memref<4x1x128xf32, #tpu.memory_space<vmem>>, vector<4x1x128xf32>
      %cst_37 = arith.constant dense<0.000000e+00> : vector<4x1xf32>
      %37 = vector.multi_reduction <add>, %36, %cst_37 [2] : vector<4x1x128xf32> to vector<4x1xf32>
      %38 = vector.shape_cast %37 : vector<4x1xf32> to vector<4x1x1xf32>
      %c0_38 = arith.constant 0 : index
      %c0_39 = arith.constant 0 : index
      %c0_40 = arith.constant 0 : index
      %39 = vector.load %arg7[%c0_38, %c0_39, %c0_40] : memref<4x1x128xf32, #tpu.memory_space<vmem>>, vector<4x1x128xf32>
      %cst_41 = arith.constant dense<0.000000e+00> : vector<4x1xf32>
      %40 = vector.multi_reduction <add>, %39, %cst_41 [2] : vector<4x1x128xf32> to vector<4x1xf32>
      %41 = vector.shape_cast %40 : vector<4x1xf32> to vector<4x1x1xf32>
      %42 = arith.subf %38, %35 : vector<4x1x1xf32>
      %43 = arith.subf %41, %35 : vector<4x1x1xf32>
      %cst_42 = arith.constant 9.99999997E-7 : f32
      %44 = vector.broadcast %cst_42 : f32 to vector<4x1x1xf32>
      %45 = arith.addf %41, %44 : vector<4x1x1xf32>
      %cst_43 = arith.constant 1.000000e+00 : f32
      %46 = vector.broadcast %cst_43 : f32 to vector<4x1x1xf32>
      %47 = arith.divf %46, %45 : vector<4x1x1xf32>
      %48 = arith.mulf %35, %47 : vector<4x1x1xf32>
      %49 = arith.mulf %42, %47 : vector<4x1x1xf32>
      %50 = arith.mulf %43, %47 : vector<4x1x1xf32>
      %cst_44 = arith.constant dense<0.000000e+00> : vector<1x1xf32>
      %51 = vector.multi_reduction <add>, %48, %cst_44 [0] : vector<4x1x1xf32> to vector<1x1xf32>
      %52 = vector.shape_cast %51 : vector<1x1xf32> to vector<1x1x1xf32>
      %cst_45 = arith.constant dense<0.000000e+00> : vector<1x1xf32>
      %53 = vector.multi_reduction <add>, %49, %cst_45 [0] : vector<4x1x1xf32> to vector<1x1xf32>
      %54 = vector.shape_cast %53 : vector<1x1xf32> to vector<1x1x1xf32>
      %cst_46 = arith.constant dense<0.000000e+00> : vector<1x1xf32>
      %55 = vector.multi_reduction <add>, %50, %cst_46 [0] : vector<4x1x1xf32> to vector<1x1xf32>
      %56 = vector.shape_cast %55 : vector<1x1xf32> to vector<1x1x1xf32>
      %cst_47 = arith.constant 2.000000e+00 : f32
      %57 = vector.broadcast %cst_47 : f32 to vector<1x1x1xf32>
      %58 = arith.mulf %57, %52 : vector<1x1x1xf32>
      %cst_48 = arith.constant 1.000000e+00 : f32
      %59 = vector.broadcast %cst_48 : f32 to vector<1x1x1xf32>
      %60 = arith.addf %58, %59 : vector<1x1x1xf32>
      %cst_49 = arith.constant 2.000000e+00 : f32
      %61 = vector.broadcast %cst_49 : f32 to vector<1x1x1xf32>
      %62 = arith.mulf %61, %52 : vector<1x1x1xf32>
      %63 = arith.addf %62, %54 : vector<1x1x1xf32>
      %64 = arith.addf %63, %56 : vector<1x1x1xf32>
      %cst_50 = arith.constant 1.000000e+00 : f32
      %65 = vector.broadcast %cst_50 : f32 to vector<1x1x1xf32>
      %66 = arith.addf %64, %65 : vector<1x1x1xf32>
      %67 = arith.divf %60, %66 : vector<1x1x1xf32>
      %c0_51 = arith.constant 0 : index
      %c0_52 = arith.constant 0 : index
      %c0_53 = arith.constant 0 : index
      %68 = vector.load %arg4[%c0_51, %c0_52, %c0_53] : memref<1x1x1xf32, #tpu.memory_space<vmem>>, vector<1x1x1xf32>
      tpu.vector_store %arg4[%c0_51, %c0_52, %c0_53], %67 {strides = array<i32>} : memref<1x1x1xf32, #tpu.memory_space<vmem>>, vector<1x1x1xf32>,
    } else {
    }
    return
  }
  func.func @transform_0(%arg0: i32, %arg1: i32) -> (i32, i32, i32, i32) {
    %c0_i32 = arith.constant 0 : i32
    %c0_i32_0 = arith.constant 0 : i32
    %c0_i32_1 = arith.constant 0 : i32
    return %arg0, %c0_i32, %arg1, %c0_i32_0 : i32, i32, i32, i32
  }
  func.func @transform_1(%arg0: i32, %arg1: i32) -> (i32, i32, i32) {
    %c0_i32 = arith.constant 0 : i32
    %c0_i32_0 = arith.constant 0 : i32
    return %arg0, %arg1, %c0_i32 : i32, i32, i32
  }
  func.func @transform_2(%arg0: i32, %arg1: i32) -> (i32, i32, i32) {
    %c0_i32 = arith.constant 0 : i32
    %c0_i32_0 = arith.constant 0 : i32
    %c0_i32_1 = arith.constant 0 : i32
    return %arg0, %c0_i32, %c0_i32_0 : i32, i32, i32
  }
}

</mosaic_0001>

<bundles_post_ra>
// kernel: tpu_custom_call.1
= control target key start
LH: loop header
LB: loop body
LE: loop exit
PB: predicated region body
PF: predicated region fallthrough
CT: control target
= control target key end

     0   :  { %7 = vsyncpa [#allocation6], 0  ;;  %s1040_s0 = inlined_call_operand.hbm [shape: f32[2,4,2,128], index: 0, kind: input, shape index: {}]   ;;  %s1041_s1 = inlined_call_operand.hbm [shape: s32[2,2,128], index: 1, kind: input, shape index: {}]   ;;  %s1042_s2 = inlined_call_operand.vmem [shape: f32[2,1,1], index: 2, kind: output, shape index: {}]  }
   0x1   :  { %9 = vsyncpa [#allocation6 + $0x1], 0 }
   0x2   :  { %10 = vsyncpa [#allocation8], 0 }
   0x3   :  { %12 = vsyncpa [#allocation8 + $0x1], 0  ;;  %s808_s9 = smov 0   ;;  %s810_s10 = smov 0  }
   0x4   :  { %s812_s11 = smov 0   ;;  %s814_s12 = smov 0  }
   0x5   :  { %s816_s13 = smov 0   ;;  %s818_s14 = smov 0  }
   0x6 LB: > { %s580_s15 = sadd.s32 4294967295, %s786_s14   ;;  %s30_s16 = sadd.s32 1, %s782_s13  ;;  %s786_s14 = sphi %s818_s14, %s18_s14   ;;  %s782_s13 = sphi %s816_s13, %s1054_s13   ;;  %s778_s12 = sphi %s814_s12, %s1053_s12   ;;  %s774_s11 = sphi %s812_s11, %s1052_s11   ;;  %s770_s10 = sphi %s810_s10, %s1051_s10   ;;  %s766_s9 = sphi %s808_s9, %s1050_s9  }
   0x7   : > { %p32_p0 = scmp.ge.s32.totalorder %s30_s16, 2  ;;  %s39_s17 = sadd.s32 1, %s774_s11 }
   0x8   : > { %p46_p1 = scmp.ne.s32.totalorder %s774_s11, %s770_s10  ;;  %p47_p2 = scmp.eq.s32.totalorder %s786_s14, 0 }
   0x9   : > { %s1056_s16 = smov (%p32_p0, %s30_s16), 0  ;;  %p52_p4 = scmp.ne.s32.totalorder %s770_s10, %s766_s9 }
   0xa   : > { %p844_p3 = por %p47_p2, %p46_p1  ;;  %s34_s19 = ssub.s32 %s782_s13, %s1056_s16 }
   0xb   : > { %p53_p5 = scmp.eq.s32.totalorder %s580_s15, 0  ;;  %p37_p6 = scmp.eq.s32.totalorder %s34_s19, 0 }
   0xc   : > { %p610_p8 = scmp.lt.s32.totalorder %s786_s14, 2  ;;  %s860_s22 = sand.u32 1, %s774_s11  }
   0xd   : > { %p851_p7 = por %p53_p5, %p52_p4  ;;  %s598_s23 = sshll.u32 %s782_s13, 7 }
   0xe   : > { %s857_s21 = scalar_select %p37_p6, %s774_s11, %s39_s17  }
   0xf   : > { %s1045_s20 = scalar_select %p851_p7, 1, 0 }
  0x10   : > { %s584_s24 = sshll.u32 %s860_s22, 3  ;;  %s867_s27 = scalar_lea.hbm %s1040_s0, %s598_s23 }
  0x11   : > { %s134_s28 = scalar_lea.vmem [#allocation5], %s584_s24  ;;  %p871_p9 = pnand %p610_p8, %p844_p3 }
  0x12   : > { %s142_s29 = sshll.u32 %s134_s28, 4  ;;  %s131_s3 = scalar_lea.sflag [#allocation6], %s860_s22  ;;  %s875_s29 = int_to_ptr.vmem [resolvable:$true] %s142_s29 }
  0x13   : > { %s672_s4 = scalar_lea.hbm %s867_s27, 128  ;;  %p674_p11 = pneg %p871_p9 }
  0x14   : > { %p673_p10 = scmp.ne.s32.totalorder %s867_s27, %s672_s4  ;;  %s677_s7 = scalar_lea.hbm %s1040_s0, 256 }
  0x15   : > { %p678_p0 = scmp.lt.u32.totalorder %s867_s27, %s1040_s0  ;;  %p679_p1 = scmp.lt.u32.totalorder %s677_s7, %s672_s4 }
  0x16   : > { %p675_p12 = pnand %p674_p11, %p673_p10  ;;  %p681_p3 = scmp.lt.u32.totalorder %s672_s4, %s867_s27 }
  0x17   : > { %p680_p2 = por %p679_p1, %p678_p0 }
  0x18   : > { %p676_p13 = pneg %p675_p12 }
  0x19   : > { %p682_p4 = por %p681_p3, %p680_p2 }
  0x1b   : > { %p683_p5 = pnand %p682_p4, %p676_p13 }
  0x1d   : > { %686 = shalt.err (!%p683_p5)
}
  0x1e   : > { %s687_s15 = scalar_lea.vmem %s875_s29, 128  ;;  %s788_s17 = smov [#allocation5]  }
  0x1f   : > { %p688_p6 = scmp.ne.s32.totalorder %s875_s29, %s687_s15  ;;  %s692_s18 = sshll.u32 %s788_s17, 4  ;;  %s693_s18 = int_to_ptr.vmem [resolvable:$false] %s692_s18 }
  0x20   : > { %s694_s19 = scalar_lea.vmem %s693_s18, 256  ;;  %p695_p12 = scmp.lt.s32.totalorder %s875_s29, %s693_s18 }
  0x21   : > { %p690_p8 = pnand %p688_p6, %p674_p11  ;;  %p696_p0 = scmp.lt.s32.totalorder %s694_s19, %s687_s15 }
  0x23   : > { %p691_p10 = pneg %p690_p8  ;;  %p697_p1 = por %p696_p0, %p695_p12 }
  0x25   : > { %p698_p2 = pnand %p697_p1, %p691_p10 }
  0x27   : > { %701 = shalt.err (!%p698_p2)
}
  0x28   : > { %s789_s23 = smov 32   ;;  %s790_s24 = smov 2  }
  0x29   : > { %606 = dma.hbm_to_vmem [thread:$0]  (!%p871_p9), %s867_s27, 128, %s875_s29, %s131_s3, %s789_s23, %s789_s23, %s790_s24  }
  0x2a   : > { %p589_p13 = scmp.ge.s32.totalorder %s786_s14, 1  ;;  %p169_p3 = scmp.lt.s32.totalorder %s786_s14, 3 }
  0x2b   : > { %s587_s25 = sshll.u32 %s860_s22, 1  ;;  %s588_s28 = sshll.u32 %s782_s13, 5 }
  0x2c   : > { %p908_p4 = pnand %p589_p13, %p169_p3  ;;  %s156_s4 = scalar_lea.vmem [#allocation7], %s587_s25 }
  0x2d   : > { %s164_s5 = sshll.u32 %s156_s4, 4  ;;  %s916_s8 = scalar_lea.hbm %s1041_s1, %s588_s28  ;;  %s165_s5 = int_to_ptr.vmem [resolvable:$true] %s164_s5 }
  0x2e   : > { %s1047_s26 = scalar_select %p908_p4, 1, 0 }
  0x2f   : > { %s153_s27 = scalar_lea.sflag [#allocation8], %s860_s22  ;;  %s702_s29 = scalar_lea.hbm %s916_s8, 32 }
  0x30   : > { %p703_p5 = scmp.ne.s32.totalorder %s916_s8, %s702_s29  ;;  %s707_s15 = scalar_lea.hbm %s1041_s1, 64 }
  0x31   : > { %p708_p10 = scmp.lt.u32.totalorder %s916_s8, %s1041_s1  ;;  %p709_p12 = scmp.lt.u32.totalorder %s707_s15, %s702_s29 }
  0x32   : > { %p705_p6 = pnand %p703_p5, %p674_p11  ;;  %p711_p1 = scmp.lt.u32.totalorder %s702_s29, %s916_s8 }
  0x33   : > { %p710_p0 = por %p709_p12, %p708_p10 }
  0x34   : > { %p706_p8 = pneg %p705_p6 }
  0x35   : > { %p712_p2 = por %p711_p1, %p710_p0 }
  0x37   : > { %p713_p13 = pnand %p712_p2, %p706_p8 }
  0x39   : > { %716 = shalt.err (!%p713_p13)
}
  0x3a   : > { %s717_s22 = scalar_lea.vmem %s165_s5, 32  ;;  %s791_s19 = smov [#allocation7]  }
  0x3b   : > { %p718_p3 = scmp.ne.s32.totalorder %s165_s5, %s717_s22  ;;  %s722_s23 = sshll.u32 %s791_s19, 4  ;;  %s723_s23 = int_to_ptr.vmem [resolvable:$false] %s722_s23 }
  0x3c   : > { %s724_s24 = scalar_lea.vmem %s723_s23, 64  ;;  %p725_p7 = scmp.lt.s32.totalorder %s165_s5, %s723_s23 }
  0x3d   : > { %p720_p5 = pnand %p718_p3, %p674_p11  ;;  %p726_p4 = scmp.lt.s32.totalorder %s724_s24, %s717_s22 }
  0x3f   : > { %p721_p6 = pneg %p720_p5  ;;  %p727_p10 = por %p726_p4, %p725_p7 }
  0x41   : > { %p728_p12 = pnand %p727_p10, %p721_p6 }
  0x43   : > { %731 = shalt.err (!%p728_p12)
}
  0x44   : > { %609 = dma.hbm_to_vmem [thread:$0]  (!%p871_p9), %s916_s8, 32, %s165_s5, %s153_s27  }
  0x45   : > { %p1048_p8 = scmp.ne.s32.totalorder %s1047_s26, 0 }
  0x46   : > { %s175_s25 = sand.u32 (!%p1048_p8), 1, %s770_s10   ;;  %p1049_p11 = scmp.ne.s32.totalorder (!%p1048_p8), %s1045_s20, 0 }
  0x47   : > { %173 = sbr.rel (%p1048_p8) target bundleno = 304 (0x130), region = 28  ;;  %s590_s28 = sshll.u32 (!%p1048_p8), %s175_s25, 3 }
  0x48   : > { %s176_s4 = scalar_lea.sflag (!%p1048_p8), [#allocation6], %s175_s25  ;;  %s941_s6 = scalar_lea.vmem (!%p1048_p8), [#allocation5], %s590_s28 }
  0x4e   : > { %757 = dma.done.wait (%p1049_p11), %s176_s4, 128  }
  0x4f   : > { %759 = vsyncadd (%p1049_p11), %s176_s4, 4294967168  ;;  %s591_s7 = sshll.u32 %s175_s25, 1  ;;  %s185_s30 = scalar_lea.sflag [#allocation8], %s175_s25 }
  0x50   : > { %s188_s29 = scalar_lea.vmem [#allocation7], %s591_s7 }
  0x51   : > { %761 = dma.done.wait (%p1049_p11), %s185_s30, 32  }
  0x52   : > { %763 = vsyncadd (%p1049_p11), %s185_s30, 4294967264  ;;  %v792_v0 = vmov 0.0   ;;  %v951_v1 = vld [vmem:[%s188_s29] sm:$0x3]  ;;  %vm256_vm0 = vcmask 1041408   ;;  %vm380_vm5 = vcmask 1040384  }
  0x53   : > { %229 = vst [vmem:[#allocation4 + $0x2] sm:$0x1] %v792_v0  ;;  %219 = vst [vmem:[#allocation2] sm:$0x1] %v792_v0  ;;  %vm238_vm1 = vcmp.eq.s32.totalorder %v951_v1, 2  ;;  %vm236_vm2 = vcmp.eq.s32.totalorder %v951_v1, 0 }
  0x54   : > { %220 = vst [vmem:[#allocation2 + $0x1] sm:$0x1] %v792_v0  ;;  %221 = vst [vmem:[#allocation2 + $0x2] sm:$0x1] %v792_v0  ;;  %v956_v2 = vld [vmem:[%s941_s6 + $0x2] sm:$0x3] }
  0x55   : > { %222 = vst [vmem:[#allocation2 + $0x3] sm:$0x1] %v792_v0  ;;  %223 = vst [vmem:[#allocation3] sm:$0x1] %v792_v0  ;;  %v594_v3 = vsel %vm238_vm1, 1.0, %v792_v0  ;;  %v592_v4 = vsel %vm236_vm2, 1.0, %v792_v0 }
  0x56   : > { %224 = vst [vmem:[#allocation3 + $0x1] sm:$0x1] %v792_v0  ;;  %225 = vst [vmem:[#allocation3 + $0x2] sm:$0x1] %v792_v0  ;;  %vm239_vm3 = vcmp.eq.s32.totalorder %v951_v1, 3  ;;  %vm237_vm4 = vcmp.eq.s32.totalorder %v951_v1, 1 }
  0x57   : > { %226 = vst [vmem:[#allocation3 + $0x3] sm:$0x1] %v792_v0  ;;  %227 = vst [vmem:[#allocation4] sm:$0x1] %v792_v0  ;;  %v231_v5 = vld [vmem:[%s941_s6] sm:$0x3] }
  0x58   : > { %228 = vst [vmem:[#allocation4 + $0x1] sm:$0x1] %v792_v0  ;;  %230 = vst [vmem:[#allocation4 + $0x3] sm:$0x1] %v792_v0  ;;  %v351_v6 = vsel %vm256_vm0, %v594_v3, 0.0  ;;  %v337_v7 = vsel %vm256_vm0, %v592_v4, 0.0 }
  0x59   : > { %v595_v8 = vsel %vm239_vm3, 1.0, %v792_v0  ;;  %v593_v9 = vsel %vm237_vm4, 1.0, %v792_v0  ;;  %v352_v10 = vrot.slane %v351_v6, 4  ;;  %v338_v11 = vrot.slane %v337_v7, 4  ;;  %v233_v22 = vld [vmem:[%s941_s6 + $0x4] sm:$0x3] }
  0x5a   : > { %v358_v12 = vsel %vm256_vm0, %v595_v8, 0.0  ;;  %v344_v13 = vsel %vm256_vm0, %v593_v9, 0.0  ;;  %v304_v16 = vsel %vm256_vm0, %v956_v2, 0.0  ;;  %v297_v17 = vsel %vm256_vm0, %v231_v5, 0.0  ;;  %v335_v43 = vld [vmem:[#allocation4 + $0x2] sm:$0x1] }
  0x5b   : > { %v359_v14 = vrot.slane %v358_v12, 4  ;;  %v345_v15 = vrot.slane %v344_v13, 4  ;;  %v353_v18 = vadd.f32 %v352_v10, %v351_v6  ;;  %v339_v19 = vadd.f32 %v338_v11, %v337_v7  ;;  %v234_v11 = vld [vmem:[%s941_s6 + $0x6] sm:$0x3]  ;;  %p212_p7 = scmp.lt.s32.totalorder %s778_s12, 1 }
  0x5c   : > { %v305_v20 = vrot.slane %v304_v16, 4  ;;  %v298_v21 = vrot.slane %v297_v17, 4  ;;  %v311_v25 = vsel %vm256_vm0, %v233_v22, 0.0  ;;  %v248_v26 = vsel %vm236_vm2, %v231_v5, 0.0  ;;  %v293_v62 = vld [vmem:[#allocation3] sm:$0x1] }
  0x5d   : > { %v360_v23 = vadd.f32 %v359_v14, %v358_v12  ;;  %v346_v24 = vadd.f32 %v345_v15, %v344_v13  ;;  %v354_v27 = vrot.slane %v353_v18, 2  ;;  %v340_v28 = vrot.slane %v339_v19, 2  ;;  %v294_v61 = vld [vmem:[#allocation3 + $0x1] sm:$0x1]  ;;  %v295_v14 = vld [vmem:[#allocation3 + $0x2] sm:$0x1] }
  0x5e   : > { %v306_v29 = vadd.f32 %v305_v20, %v304_v16  ;;  %v299_v30 = vadd.f32 %v298_v21, %v297_v17  ;;  %v312_v33 = vrot.slane %v311_v25, 4  ;;  %v257_v34 = vsel %vm256_vm0, %v248_v26, 0.0  ;;  %v333_v48 = vld [vmem:[#allocation4] sm:$0x1]  ;;  %v252_v21 = vld [vmem:[#allocation2] sm:$0x1] }
  0x5f   : > { %v361_v31 = vrot.slane %v360_v23, 2  ;;  %v347_v32 = vrot.slane %v346_v24, 2  ;;  %v355_v35 = vadd.f32 %v354_v27, %v353_v18  ;;  %v341_v36 = vadd.f32 %v340_v28, %v339_v19  ;;  %v336_v55 = vld [vmem:[#allocation4 + $0x3] sm:$0x1]  ;;  %v334_v56 = vld [vmem:[#allocation4 + $0x1] sm:$0x1] }
  0x60   : > { %v307_v37 = vrot.slane %v306_v29, 2  ;;  %v300_v38 = vrot.slane %v299_v30, 2  ;;  %v313_v41 = vadd.f32 %v312_v33, %v311_v25  ;;  %v258_v42 = vrot.slane %v257_v34, 4  ;;  %s1058_s12 = smov (!%p212_p7, %s778_s12), 1 }
  0x61   : > { %v362_v39 = vadd.f32 %v361_v31, %v360_v23  ;;  %v348_v40 = vadd.f32 %v347_v32, %v346_v24  ;;  %v356_v44 = vrot.slane %v355_v35, 1  ;;  %v342_v45 = vrot.slane %v341_v36, 1  ;;  %s214_s5 = scalar_lea.vmem %s1042_s2, %s1058_s12 }
  0x62   : > { %v308_v46 = vadd.f32 %v307_v37, %v306_v29  ;;  %v301_v47 = vadd.f32 %v300_v38, %v299_v30  ;;  %v314_v51 = vrot.slane %v313_v41, 2  ;;  %v259_v52 = vadd.f32 %v258_v42, %v257_v34 }
  0x63   : > { %v363_v49 = vrot.slane %v362_v39, 1  ;;  %v349_v50 = vrot.slane %v348_v40, 1  ;;  %v357_v53 = vadd.f32 %v356_v44, %v355_v35  ;;  %v343_v54 = vadd.f32 %v342_v45, %v341_v36  ;;  %v253_v45 = vld [vmem:[#allocation2 + $0x1] sm:$0x1] }
  0x64   : > { %v309_v57 = vrot.slane %v308_v46, 1  ;;  %v302_v58 = vrot.slane %v301_v47, 1  ;;  %v315_v63 = vadd.f32 %v314_v51, %v313_v41  ;;  %v260_v0 = vrot.slane %v259_v52, 2 }
  0x65   : > { %v364_v59 = vadd.f32 %v363_v49, %v362_v39  ;;  %v350_v60 = vadd.f32 %v349_v50, %v348_v40  ;;  %v367_v3 = vadd.f32 %v357_v53, %v335_v43  ;;  %v365_v4 = vadd.f32 %v343_v54, %v333_v48  ;;  %v254_v50 = vld [vmem:[#allocation2 + $0x2] sm:$0x1] }
  0x66   : > { %v310_v5 = vadd.f32 %v309_v57, %v308_v46  ;;  %v303_v6 = vadd.f32 %v302_v58, %v301_v47  ;;  %v316_v9 = vrot.slane %v315_v63, 1  ;;  %v261_v10 = vadd.f32 %v260_v0, %v259_v52  ;;  %v296_v58 = vld [vmem:[#allocation3 + $0x3] sm:$0x1] }
  0x67   : > { %v368_v7 = vadd.f32 %v364_v59, %v336_v55  ;;  %v366_v8 = vadd.f32 %v350_v60, %v334_v56  ;;  %371 = vst [vmem:[#allocation4 + $0x2] sm:$0x1] %v367_v3  ;;  %369 = vst [vmem:[#allocation4] sm:$0x1] %v365_v4  ;;  %v249_v15 = vsel %vm237_vm4, %v956_v2, 0.0  ;;  %v250_v16 = vsel %vm238_vm1, %v233_v22, 0.0 }
  0x68   : > { %v326_v12 = vadd.f32 %v310_v5, %v294_v61  ;;  %v325_v13 = vadd.f32 %v303_v6, %v293_v62  ;;  %v317_v17 = vadd.f32 %v316_v9, %v315_v63  ;;  %v262_v18 = vrot.slane %v261_v10, 1 }
  0x69   : > { %372 = vst [vmem:[#allocation4 + $0x3] sm:$0x1] %v368_v7  ;;  %370 = vst [vmem:[#allocation4 + $0x1] sm:$0x1] %v366_v8  ;;  %v264_v19 = vsel %vm256_vm0, %v249_v15, 0.0  ;;  %v271_v20 = vsel %vm256_vm0, %v250_v16, 0.0 }
  0x6a   : > { %330 = vst [vmem:[#allocation3 + $0x1] sm:$0x1] %v326_v12  ;;  %329 = vst [vmem:[#allocation3] sm:$0x1] %v325_v13  ;;  %v265_v23 = vrot.slane %v264_v19, 4  ;;  %v272_v24 = vrot.slane %v271_v20, 4  ;;  %v327_v26 = vadd.f32 %v317_v17, %v295_v14  ;;  %v263_v22 = vadd.f32 %v262_v18, %v261_v10 }
  0x6b   : > { %v318_v25 = vsel %vm256_vm0, %v234_v11, 0.0  ;;  %v251_v2 = vsel %vm239_vm3, %v234_v11, 0.0  ;;  %v255_v7 = vld [vmem:[#allocation2 + $0x3] sm:$0x1]  ;;  %vm485_vm6 = vcmask 0  }
  0x6c   : > { %v319_v27 = vrot.slane %v318_v25, 4  ;;  %v278_v28 = vsel %vm256_vm0, %v251_v2, 0.0  ;;  %v266_v29 = vadd.f32 %v265_v23, %v264_v19  ;;  %v273_v30 = vadd.f32 %v272_v24, %v271_v20  ;;  %331 = vst [vmem:[#allocation3 + $0x2] sm:$0x1] %v327_v26 }
  0x6d   : > { %v279_v31 = vrot.slane %v278_v28, 4  ;;  %v285_v32 = vadd.f32 %v263_v22, %v252_v21 }
  0x6e   : > { %v320_v33 = vadd.f32 %v319_v27, %v318_v25  ;;  %v267_v34 = vrot.slane %v266_v29, 2  ;;  %v274_v35 = vrot.slane %v273_v30, 2  ;;  %v411_v36 = vld [vmem:[#allocation4 + $0x2] sm:$0x1]  ;;  %v409_v37 = vld [vmem:[#allocation4] sm:$0x1] }
  0x6f   : > { %289 = vst [vmem:[#allocation2] sm:$0x1] %v285_v32  ;;  %v280_v1 = vadd.f32 %v279_v31, %v278_v28  ;;  %v419_v39 = vsel %vm380_vm5, %v411_v36, 0.0  ;;  %v413_v40 = vsel %vm380_vm5, %v409_v37, 0.0 }
  0x70   : > { %v321_v38 = vrot.slane %v320_v33, 2  ;;  %v412_v41 = vld [vmem:[#allocation4 + $0x3] sm:$0x1]  ;;  %v410_v42 = vld [vmem:[#allocation4 + $0x1] sm:$0x1]  ;;  %v268_v43 = vadd.f32 %v267_v34, %v266_v29  ;;  %v275_v44 = vadd.f32 %v274_v35, %v273_v30  ;;  %420 = vadd.xlane.f32.xlu1 %v419_v39  ;;  %414 = vadd.xlane.f32.xlu0 %v413_v40 }
  0x71   : > { %v422_v47 = vsel %vm380_vm5, %v412_v41, 0.0  ;;  %v416_v48 = vsel %vm380_vm5, %v410_v42, 0.0  ;;  %v394_v52 = vld [vmem:[#allocation3 + $0x1] sm:$0x1]  ;;  %v393_v53 = vld [vmem:[#allocation3] sm:$0x1] }
  0x72   : > { %v322_v46 = vadd.f32 %v321_v38, %v320_v33  ;;  %v269_v49 = vrot.slane %v268_v43, 1  ;;  %v276_v51 = vrot.slane %v275_v44, 1  ;;  %v281_v55 = vrot.slane %v280_v1, 2 }
  0x73   : > { %v400_v61 = vsel %vm380_vm5, %v394_v52, 0.0  ;;  %v397_v62 = vsel %vm380_vm5, %v393_v53, 0.0  ;;  %v395_v3 = vld [vmem:[#allocation3 + $0x2] sm:$0x1] }
  0x74   : > { %v323_v54 = vrot.slane %v322_v46, 1  ;;  %v270_v56 = vadd.f32 %v269_v49, %v268_v43  ;;  %v277_v57 = vadd.f32 %v276_v51, %v275_v44  ;;  %423 = vadd.xlane.f32.xlu1 %v422_v47  ;;  %417 = vadd.xlane.f32.xlu0 %v416_v48  ;;  %v282_v60 = vadd.f32 %v281_v55, %v280_v1 }
  0x75   : > { %v403_v9 = vsel %vm380_vm5, %v395_v3, 0.0 }
  0x76   : > { %v324_v59 = vadd.f32 %v323_v54, %v322_v46  ;;  %v286_v63 = vadd.f32 %v270_v56, %v253_v45  ;;  %v287_v0 = vadd.f32 %v277_v57, %v254_v50  ;;  %v376_v4 = vld [vmem:[#allocation2] sm:$0x1]  ;;  %v283_v6 = vrot.slane %v282_v60, 1 }
  0x77   : > { %v381_v10 = vsel %vm380_vm5, %v376_v4, 0.0 }
  0x78   : > { %v328_v5 = vadd.f32 %v324_v59, %v296_v58  ;;  %290 = vst [vmem:[#allocation2 + $0x1] sm:$0x1] %v286_v63  ;;  %291 = vst [vmem:[#allocation2 + $0x2] sm:$0x1] %v287_v0  ;;  %401 = vadd.xlane.f32.xlu1 %v400_v61  ;;  %398 = vadd.xlane.f32.xlu0 %v397_v62  ;;  %v284_v8 = vadd.f32 %v283_v6, %v282_v60 }
  0x7a   : > { %332 = vst [vmem:[#allocation3 + $0x3] sm:$0x1] %v328_v5  ;;  %v288_v11 = vadd.f32 %v284_v8, %v255_v7 }
  0x7c   : > { %404 = vadd.xlane.f32.xlu1 %v403_v9  ;;  %382 = vadd.xlane.f32.xlu0 %v381_v10  ;;  %292 = vst [vmem:[#allocation2 + $0x3] sm:$0x1] %v288_v11 }
  0x7f   : > { %v377_v12 = vld [vmem:[#allocation2 + $0x1] sm:$0x1]  ;;  %v378_v13 = vld [vmem:[#allocation2 + $0x2] sm:$0x1] }
  0x80   : > { %v384_v14 = vsel %vm380_vm5, %v377_v12, 0.0  ;;  %v387_v15 = vsel %vm380_vm5, %v378_v13, 0.0 }
  0x81   : > { %v396_v16 = vld [vmem:[#allocation3 + $0x3] sm:$0x1]  ;;  %385 = vadd.xlane.f32.xlu1 %v384_v14  ;;  %388 = vadd.xlane.f32.xlu0 %v387_v15 }
  0x82   : > { %v406_v17 = vsel %vm380_vm5, %v396_v16, 0.0 }
  0x83   : > { %v379_v18 = vld [vmem:[#allocation2 + $0x3] sm:$0x1] }
  0x84   : > { %v390_v19 = vsel %vm380_vm5, %v379_v18, 0.0 }
  0x85   : > { %407 = vadd.xlane.f32.xlu1 %v406_v17  ;;  %391 = vadd.xlane.f32.xlu0 %v390_v19 }
  0xfd   : > { %v421_v20 = vpop.xlane.xlu1 %420  ;;  %v415_v21 = vpop.xlane.xlu0 %414 }
  0xfe   : > { %v433_v23 = vadd.f32 1e-06, %v415_v21  ;;  %v435_v24 = vadd.f32 1e-06, %v421_v20 }
 0x100   : > { %662 = vrcp.f32 %v433_v23 }
 0x101   : > { %v424_v25 = vpop.xlane.xlu1 %423  ;;  %v418_v2 = vpop.xlane.xlu0 %417  ;;  %664 = vrcp.f32 %v435_v24 }
 0x102   : > { %v434_v26 = vadd.f32 1e-06, %v418_v2  ;;  %v436_v28 = vadd.f32 1e-06, %v424_v25 }
 0x104   : > { %666 = vrcp.f32 %v434_v26 }
 0x105   : > { %v402_v22 = vpop.xlane.xlu1 %401  ;;  %v399_v27 = vpop.xlane.xlu0 %398  ;;  %668 = vrcp.f32 %v436_v28 }
 0x109   : > { %v405_v29 = vpop.xlane.xlu1 %404  ;;  %v383_v30 = vpop.xlane.xlu0 %382 }
 0x10a   : > { %v425_v31 = vsub.f32 %v399_v27, %v383_v30  ;;  %v429_v32 = vsub.f32 %v415_v21, %v383_v30  ;;  %v663_v33 = vpop.eup %662 }
 0x10b   : > { %v445_v34 = vmul.f32 %v663_v33, %v383_v30  ;;  %v665_v38 = vpop.eup %664 }
 0x10c   : > { %v449_v35 = vmul.f32 %v663_v33, %v425_v31  ;;  %v453_v1 = vmul.f32 %v663_v33, %v429_v32 }
 0x10d   : > { %v457_v47 = vsel %vm380_vm5, %v445_v34, 0.0 }
 0x10e   : > { %v386_v36 = vpop.xlane.xlu1 %385  ;;  %v389_v37 = vpop.xlane.xlu0 %388  ;;  %v464_v48 = vsel %vm380_vm5, %v449_v35, 0.0  ;;  %v471_v52 = vsel %vm380_vm5, %v453_v1, 0.0 }
 0x10f   : > { %v426_v39 = vsub.f32 %v402_v22, %v386_v36  ;;  %v667_v40 = vpop.eup %666  ;;  %v430_v41 = vsub.f32 %v418_v2, %v386_v36  ;;  %v427_v42 = vsub.f32 %v405_v29, %v389_v37  ;;  %v431_v43 = vsub.f32 %v421_v20, %v389_v37 }
 0x110   : > { %v447_v44 = vmul.f32 %v665_v38, %v389_v37  ;;  %v446_v45 = vmul.f32 %v667_v40, %v386_v36  ;;  %v669_v61 = vpop.eup %668 }
 0x111   : > { %v450_v46 = vmul.f32 %v667_v40, %v426_v39  ;;  %v454_v49 = vmul.f32 %v667_v40, %v430_v41  ;;  %v451_v50 = vmul.f32 %v665_v38, %v427_v42  ;;  %v455_v55 = vmul.f32 %v665_v38, %v431_v43 }
 0x112   : > { %v408_v51 = vpop.xlane.xlu1 %407  ;;  %v458_v53 = vsel %vm380_vm5, %v446_v45, 0.0  ;;  %v392_v56 = vpop.xlane.xlu0 %391  ;;  %v460_v60 = vsel %vm380_vm5, %v447_v44, 0.0 }
 0x113   : > { %v465_v54 = vsel %vm380_vm5, %v450_v46, 0.0  ;;  %v459_v57 = vadd.f32 %v458_v53, %v457_v47  ;;  %v472_v59 = vsel %vm380_vm5, %v454_v49, 0.0  ;;  %v467_v63 = vsel %vm380_vm5, %v451_v50, 0.0 }
 0x114   : > { %v466_v58 = vadd.f32 %v465_v54, %v464_v48  ;;  %v473_v62 = vadd.f32 %v472_v59, %v471_v52  ;;  %v428_v0 = vsub.f32 %v408_v51, %v392_v56  ;;  %v432_v3 = vsub.f32 %v424_v25, %v392_v56 }
 0x115   : > { %v461_v4 = vadd.f32 %v460_v60, %v459_v57  ;;  %v448_v6 = vmul.f32 %v669_v61, %v392_v56  ;;  %v474_v9 = vsel %vm380_vm5, %v455_v55, 0.0 }
 0x116   : > { %v468_v5 = vadd.f32 %v467_v63, %v466_v58  ;;  %v452_v7 = vmul.f32 %v669_v61, %v428_v0  ;;  %v456_v8 = vmul.f32 %v669_v61, %v432_v3  ;;  %v475_v11 = vadd.f32 %v474_v9, %v473_v62 }
 0x117   : > { %v462_v10 = vsel %vm380_vm5, %v448_v6, 0.0 }
 0x118   : > { %v463_v12 = vadd.f32 %v462_v10, %v461_v4  ;;  %v469_v13 = vsel %vm380_vm5, %v452_v7, 0.0  ;;  %v476_v15 = vsel %vm380_vm5, %v456_v8, 0.0 }
 0x119   : > { %v470_v14 = vadd.f32 %v469_v13, %v468_v5  ;;  %v477_v17 = vadd.f32 %v476_v15, %v475_v11 }
 0x11a   : > { %v478_v16 = vmul.f32 2.0, %v463_v12 }
 0x11c   : > { %v480_v18 = vadd.f32 %v478_v16, %v470_v14  ;;  %v479_v21 = vadd.f32 1.0, %v478_v16 }
 0x11e   : > { %v481_v19 = vadd.f32 %v480_v18, %v477_v17 }
 0x120   : > { %v482_v20 = vadd.f32 1.0, %v481_v19 }
 0x122   : > { %670 = vrcp.f32 %v482_v20 }
 0x12c   : > { %v671_v23 = vpop.eup %670 }
 0x12d   : > { %v484_v24 = vmul.f32 %v671_v23, %v479_v21 }
 0x12f   : > { %486 = vst.msk [vmem:[%s214_s5] sm:$0x1] %vm485_vm6, %v484_v24 }
 0x130 PF: > { %s18_s14 = sadd.s32 1, %s786_s14   ;;  %s1050_s9 = smov %s770_s10 }
 0x131   : > { %p15_p9 = scmp.ge.s32.totalorder %s18_s14, 4   ;;  %s1051_s10 = smov %s774_s11 }
 0x132   : > { %s1052_s11 = smov %s857_s21  ;;  %s1053_s12 = smov %s782_s13 }
 0x133   : > { %s1054_s13 = smov %s1056_s16  ;;  %17 = sbr.rel (!%p15_p9) target bundleno = 6 (0x6), region = 89 }
 0x13a   :  { %504 = vsyncpa [#allocation6], 1 }
 0x13b   :  { %506 = vsyncpa [#allocation6 + $0x1], 1 }
 0x13c   :  { %507 = vsyncpa [#allocation8], 1 }
 0x13d   :  { %509 = vsyncpa [#allocation8 + $0x1], 1 }

</bundles_post_ra>
